<compile_context>
chip_gen: v5e
topology: v5e:2x2
jax: 0.10.0
libtpu: 0.0.40
codegen_flags: <defaults>
</compile_context>

<pallas_src>
import numpy as np
import jax
import jax.numpy as jnp
from jax.experimental import pallas as pl
from jax.experimental.pallas import tpu as pltpu


# ----------------------------------------------------------------------------
# Deterministic mel filterbank (re-implementation of librosa.filters.mel with
# default args: htk=False (Slaney mel scale), norm='slaney').
# ----------------------------------------------------------------------------
def _hz_to_mel(freqs: np.ndarray) -> np.ndarray:
    freqs = np.asarray(freqs, dtype=np.float64)
    f_min, f_sp = 0.0, 200.0 / 3
    mels = (freqs - f_min) / f_sp
    min_log_hz = 1000.0
    min_log_mel = (min_log_hz - f_min) / f_sp
    logstep = np.log(6.4) / 27.0
    log_region = freqs >= min_log_hz
    mels = np.where(
        log_region,
        min_log_mel + np.log(np.maximum(freqs, min_log_hz) / min_log_hz) / logstep,
        mels,
    )
    return mels


def _mel_to_hz(mels: np.ndarray) -> np.ndarray:
    mels = np.asarray(mels, dtype=np.float64)
    f_min, f_sp = 0.0, 200.0 / 3
    freqs = f_min + f_sp * mels
    min_log_hz = 1000.0
    min_log_mel = (min_log_hz - f_min) / f_sp
    logstep = np.log(6.4) / 27.0
    log_region = mels >= min_log_mel
    freqs = np.where(
        log_region,
        min_log_hz * np.exp(logstep * (mels - min_log_mel)),
        freqs,
    )
    return freqs


def make_mel_filterbank(sample_rate: int, n_fft: int, n_mels: int) -> np.ndarray:
    fmin, fmax = 0.0, sample_rate / 2.0
    n_freqs = n_fft // 2 + 1
    fftfreqs = np.linspace(0.0, sample_rate / 2.0, n_freqs)

    mel_min = _hz_to_mel(np.array([fmin]))[0]
    mel_max = _hz_to_mel(np.array([fmax]))[0]
    mel_pts = np.linspace(mel_min, mel_max, n_mels + 2)
    mel_f = _mel_to_hz(mel_pts)

    fdiff = np.diff(mel_f)
    ramps = mel_f[:, None] - fftfreqs[None, :]

    lower = -ramps[:-2] / fdiff[:-1, None]
    upper = ramps[2:] / fdiff[1:, None]
    weights = np.maximum(0.0, np.minimum(lower, upper))

    # slaney normalization
    enorm = 2.0 / (mel_f[2 : n_mels + 2] - mel_f[:n_mels])
    weights *= enorm[:, None]

    return weights.astype(np.float32)  # (n_mels, n_freqs)


def _round_up(x: int, m: int) -> int:
    return ((x + m - 1) // m) * m


# ----------------------------------------------------------------------------
# Pallas kernel: one (M, F) @ (F, tT) MXU matmul per (batch, time-tile) step.
# ----------------------------------------------------------------------------
def _mel_scale_kernel(x_ref, mel_ref, o_ref):
    # x_ref  : (F_pad, tT)  spectrogram tile for one batch / time tile
    # mel_ref: (M, F_pad)   resident mel filterbank (constant block index)
    # o_ref  : (M, tT)
    o_ref[...] = jnp.dot(
        mel_ref[...], x_ref[...], preferred_element_type=jnp.float32
    ).astype(o_ref.dtype)


def mel_scale(x: jax.Array, mel: jax.Array, *, block_t: int = 1024,
              compute_dtype=None) -> jax.Array:
    """y = einsum('bft,mf->bmt', x, mel) via a Pallas TPU kernel.

    F is zero-padded to a multiple of 8 and T to a multiple of the
    (128-aligned) time tile; the padding contributes exact zeros and is
    sliced off, so the result matches the unpadded einsum.
    """
    B, F, T = x.shape
    M, F2 = mel.shape
    assert F == F2, f"frequency dims mismatch: {F} vs {F2}"

    out_dtype = x.dtype

    # Optional reduced-precision inputs (halves HBM traffic; f32 accumulation
    # and f32 output are kept).  Default: keep f32 for strict parity.
    if compute_dtype is not None:
        x = x.astype(compute_dtype)
        mel = mel.astype(compute_dtype)

    itemsize = jnp.dtype(x.dtype).itemsize

    # ---- tile sizing -------------------------------------------------------
    F_pad = _round_up(F, 8)                                   # sublane-aligned K
    tT = _round_up(min(block_t, _round_up(T, 128)), 128)      # lane-dense time tile

    # Keep the double-buffered working set well under v7x's 64 MiB physical
    # VMEM (also comfortably inside the 128 MiB parts).
    def _vmem_bytes(t: int) -> int:
        # 2x double-buffered x + out tiles, 2x mel (budget conservatively).
        return 2 * (F_pad * t + M * t) * itemsize + 2 * M * F_pad * itemsize

    while tT > 128 and _vmem_bytes(tT) > 48 * 1024 * 1024:
        tT //= 2
    T_pad = _round_up(T, tT)

    # ---- zero-pad inputs (numerically exact) -------------------------------
    if F_pad != F or T_pad != T:
        x = jnp.pad(x, ((0, 0), (0, F_pad - F), (0, T_pad - T)))
    if F_pad != F:
        mel = jnp.pad(mel, ((0, 0), (0, F_pad - F)))

    grid = (B, T_pad // tT)
    vmem_limit = int(min(max(2 * _vmem_bytes(tT), 32 << 20), 64 << 20))

    cost = pl.CostEstimate(
        flops=2 * B * M * F * T,
        transcendentals=0,
        bytes_accessed=itemsize * (B * F * T + M * F)
        + jnp.dtype(out_dtype).itemsize * B * M * T,
    )

    y = pl.pallas_call(
        _mel_scale_kernel,
        out_shape=jax.ShapeDtypeStruct((B, M, T_pad), out_dtype),
        grid_spec=pltpu.PrefetchScalarGridSpec(
            num_scalar_prefetch=0,
            grid=grid,
            in_specs=[
                pl.BlockSpec((pl.Squeezed(), F_pad, tT), lambda b, t: (b, 0, t)),
                pl.BlockSpec((M, F_pad), lambda b, t: (0, 0)),
            ],
            out_specs=pl.BlockSpec((pl.Squeezed(), M, tT), lambda b, t: (b, 0, t)),
        ),
        compiler_params=pltpu.CompilerParams(
            dimension_semantics=("parallel", "parallel"),
            vmem_limit_bytes=vmem_limit,
        ),
        cost_estimate=cost,
    )(x, mel)

    if T_pad != T:
        y = y[:, :, :T]
    return y


if __name__ == "__main__":
    # Small, module-consistent shapes.
    sample_rate = 16000
    n_fft = 32               # -> F = 17 frequency bins
    n_mels = 8
    B, T = 2, 16
    F = n_fft // 2 + 1

    mel_np = make_mel_filterbank(sample_rate, n_fft, n_mels)   # (8, 17)
    mel = jnp.asarray(mel_np, dtype=jnp.float32)

    key = jax.random.PRNGKey(0)
    x = jax.random.normal(key, (B, F, T), dtype=jnp.float32)

    y = mel_scale(x, mel)
    y = jax.block_until_ready(y)

    # Reference check against plain-JAX einsum (same semantics as torch.einsum).
    y_ref = jnp.einsum("bft,mf->bmt", x, mel)
    np.testing.assert_allclose(np.asarray(y), np.asarray(y_ref), rtol=1e-5, atol=1e-5)

    print("KERNEL_OK")
</pallas_src>

<mosaic_0001>
module attributes {stable_mosaic.version = 11 : i64} {
  func.func @_mel_scale_kernel(%arg0: i32, %arg1: i32, %arg2: memref<1x24x128xf32, #tpu.memory_space<vmem>>, %arg3: memref<8x24xf32, #tpu.memory_space<vmem>>, %arg4: memref<1x8x128xf32, #tpu.memory_space<vmem>>) attributes {dimension_semantics = [#tpu.dimension_semantics<parallel>, #tpu.dimension_semantics<parallel>], iteration_bounds = array<i64: 2, 1>, scalar_prefetch = 0 : i64, scratch_operands = 0 : i64, tpu.core_type = #tpu.core_type<tc>, window_params = [{transform_indices = @transform_0, window_bounds = array<i64: 1, 24, 128>}, {pipeline_mode = #tpu.pipeline_mode<synchronous>, transform_indices = @transform_1, window_bounds = array<i64: 8, 24>}, {transform_indices = @transform_2, window_bounds = array<i64: 1, 8, 128>}]} {
    %c0 = arith.constant 0 : index
    %c0_0 = arith.constant 0 : index
    %0 = vector.load %arg3[%c0, %c0_0] : memref<8x24xf32, #tpu.memory_space<vmem>>, vector<8x24xf32>
    %c0_1 = arith.constant 0 : index
    %c0_2 = arith.constant 0 : index
    %c0_3 = arith.constant 0 : index
    %1 = vector.load %arg2[%c0_1, %c0_2, %c0_3] : memref<1x24x128xf32, #tpu.memory_space<vmem>>, vector<1x24x128xf32>
    %2 = vector.shape_cast %1 : vector<1x24x128xf32> to vector<24x128xf32>
    %cst = arith.constant dense<0.000000e+00> : vector<8x128xf32>
    %3 = tpu.matmul %0, %2, %cst {dimension_numbers = #tpu.dot_dimension_numbers<[1], [0], [0], [1], [0, 0, 1, 1], [], []>} : vector<8x24xf32>, vector<24x128xf32>, vector<8x128xf32> -> vector<8x128xf32>
    %c0_4 = arith.constant 0 : index
    %c0_5 = arith.constant 0 : index
    %c0_6 = arith.constant 0 : index
    %4 = vector.load %arg4[%c0_4, %c0_5, %c0_6] : memref<1x8x128xf32, #tpu.memory_space<vmem>>, vector<1x8x128xf32>
    %5 = vector.shape_cast %4 : vector<1x8x128xf32> to vector<8x128xf32>
    %6 = vector.shape_cast %3 : vector<8x128xf32> to vector<1x8x128xf32>
    tpu.vector_store %arg4[%c0_4, %c0_5, %c0_6], %6 {strides = array<i32>} : memref<1x8x128xf32, #tpu.memory_space<vmem>>, vector<1x8x128xf32>,
    return
  }
  func.func @transform_0(%arg0: i32, %arg1: i32) -> (i32, i32, i32) {
    %c0_i32 = arith.constant 0 : i32
    %c0_i32_0 = arith.constant 0 : i32
    return %arg0, %c0_i32, %arg1 : i32, i32, i32
  }
  func.func @transform_1(%arg0: i32, %arg1: i32) -> (i32, i32) {
    %c0_i32 = arith.constant 0 : i32
    %c0_i32_0 = arith.constant 0 : i32
    %c0_i32_1 = arith.constant 0 : i32
    return %c0_i32, %c0_i32_0 : i32, i32
  }
  func.func @transform_2(%arg0: i32, %arg1: i32) -> (i32, i32, i32) {
    %c0_i32 = arith.constant 0 : i32
    %c0_i32_0 = arith.constant 0 : i32
    return %arg0, %c0_i32, %arg1 : i32, i32, i32
  }
}

</mosaic_0001>

<bundles_post_ra>
// kernel: tpu_custom_call.1
= control target key start
LH: loop header
LB: loop body
LE: loop exit
PB: predicated region body
PF: predicated region fallthrough
CT: control target
= control target key end

     0   :  { %7 = vsyncpa [#allocation3], 0  ;;  %s743_s0 = inlined_call_operand.hbm [shape: f32[2,24,128], index: 0, kind: input, shape index: {}]   ;;  %s744_s1 = inlined_call_operand.hbm [shape: f32[8,24], index: 1, kind: input, shape index: {}]   ;;  %s745_s2 = inlined_call_operand.hbm [shape: f32[2,8,128], index: 2, kind: output, shape index: {}]  }
   0x1   :  { %9 = vsyncpa [#allocation3 + $0x1], 0 }
   0x2   :  { %10 = vsyncpa [#allocation6], 0 }
   0x3   :  { %11 = vsyncpa [#allocation4], 0 }
   0x4   :  { %13 = vsyncpa [#allocation4 + $0x1], 0  ;;  %s591_s9 = smov 0   ;;  %s593_s10 = smov 0  }
   0x5   :  { %s595_s11 = smov 0   ;;  %s597_s12 = smov 0  }
   0x6   :  { %s599_s13 = smov 0   ;;  %s601_s14 = smov 0  }
   0x7 LB: > { %s333_s15 = sadd.s32 4294967295, %s571_s14   ;;  %s334_s16 = sadd.s32 4294967294, %s571_s14   ;;  %s571_s14 = sphi %s601_s14, %s19_s14   ;;  %s567_s13 = sphi %s599_s13, %s757_s13   ;;  %s563_s12 = sphi %s597_s12, %s756_s12   ;;  %s559_s11 = sphi %s595_s11, %s755_s11   ;;  %s555_s10 = sphi %s593_s10, %s754_s10   ;;  %s551_s9 = sphi %s591_s9, %s753_s9  }
   0x8   : > { %s40_s17 = sadd.s32 1, %s559_s11  ;;  %p47_p0 = scmp.ne.s32.totalorder %s559_s11, %s555_s10 }
   0x9   : > { %p48_p1 = scmp.eq.s32.totalorder %s571_s14, 0  ;;  %p53_p2 = scmp.ne.s32.totalorder %s555_s10, %s551_s9 }
   0xa   : > { %p629_p3 = scmp.eq.s32.totalorder %s333_s15, 0  ;;  %p100_p4 = scmp.eq.s32.totalorder %s333_s15, 1 }
   0xb   : > { %p633_p5 = por %p48_p1, %p47_p0  ;;  %p106_p6 = scmp.eq.s32.totalorder %s334_s16, 1 }
   0xc   : > { %p639_p7 = por %p629_p3, %p53_p2  ;;  %p643_p8 = por %p100_p4, %p47_p0 }
   0xd   : > { %p647_p9 = por %p106_p6, %p53_p2  ;;  %p335_p10 = scmp.ge.s32.totalorder %s571_s14, 1 }
   0xe   : > { %p113_p11 = scmp.lt.s32.totalorder %s571_s14, 3  ;;  %s125_s25 = sshll.u32 %s744_s1, 4  ;;  %s126_s25 = int_to_ptr.hbm [resolvable:$true] %s125_s25 }
   0xf   : > { %s573_s27 = smov [#allocation5]   ;;  %p337_p13 = scmp.ge.s32.totalorder %s571_s14, 2 }
  0x10   : > { %p656_p12 = pnand %p335_p10, %p113_p11  ;;  %s127_s28 = sshll.u32 %s573_s27, 4  ;;  %s128_s28 = int_to_ptr.vmem [resolvable:$true] %s127_s28 }
  0x11   : > { %p371_p1 = scmp.lt.s32.totalorder %s571_s14, 2  ;;  %s31_s30 = sadd.s32 1, %s567_s13 }
  0x12   : > { %p358_p0 = pneg %p656_p12  ;;  %p33_p6 = scmp.ge.s32.totalorder %s31_s30, 2 }
  0x13   : > { %p668_p4 = pnand %p371_p1, %p633_p5  ;;  %s138_s3 = sand.u32 1, %s559_s11  }
  0x14   : > { %p359_p2 = pnand %p358_p0, %p629_p3  ;;  %s759_s30 = smov (%p33_p6, %s31_s30), 0 }
  0x15   : > { %s347_s4 = smul.u32 24, %s138_s3  ;;  %s35_s5 = ssub.s32 %s567_s13, %s759_s30 }
  0x16   : > { %361 = dma.hbm_to_vmem [thread:$0]  (!%p359_p2), %s126_s25, 128, %s128_s28, [#allocation6]  }
  0x17   : > { %s348_s6 = smul.u32 24, %s567_s13  ;;  %p38_p10 = scmp.eq.s32.totalorder %s35_s5, 0 }
  0x18   : > { %s142_s16 = scalar_lea.vmem [#allocation2], %s347_s4  ;;  %s139_s25 = scalar_lea.sflag [#allocation3], %s138_s3 }
  0x19   : > { %s148_s15 = scalar_lea.hbm %s743_s0, %s348_s6  ;;  %s151_s19 = sshll.u32 %s142_s16, 4  ;;  %s152_s19 = int_to_ptr.vmem [resolvable:$true] %s151_s19 }
  0x1a   : > { %s685_s23 = scalar_select %p38_p10, %s559_s11, %s40_s17  }
  0x1b   : > { %s149_s24 = sshll.u32 %s148_s15, 4  ;;  %s574_s27 = smov 128   ;;  %s150_s24 = int_to_ptr.hbm [resolvable:$true] %s149_s24 }
  0x1c   : > { %s575_s28 = smov 8   ;;  %163 = sbr.rel (%p656_p12) target bundleno = 172 (0xac), region = 28 }
  0x1d   : > { %365 = dma.hbm_to_vmem [thread:$0]  (!%p668_p4), %s150_s24, 384, %s152_s19, %s139_s25, %s574_s27, %s574_s27, %s575_s28  }
  0x1e   : > { %s692_s5 = sand.u32 (!%p656_p12), 1, %s555_s10  }
  0x1f   : > { %s349_s4 = smul.u32 (!%p656_p12), 24, %s692_s5  ;;  %s166_s17 = scalar_lea.sflag (!%p656_p12), [#allocation3], %s692_s5 }
  0x21   : > { %s169_s6 = scalar_lea.vmem [#allocation2], %s349_s4 }
  0x22   : > { %538 = dma.done.wait (%p639_p7), %s166_s17, 384  }
  0x23   : > { %540 = vsyncadd (%p639_p7), %s166_s17, 4294966912 }
  0x24   : > { %542 = dma.done.wait (%p629_p3), [#allocation6], 128  }
  0x25   : > { %544 = vsyncadd (%p629_p3), [#allocation6], 4294967168  ;;  %v199_v0 = vld [vmem:[%s169_s6 + $0x10] sm:$0xff]  ;;  %v198_v1 = vld [vmem:[%s169_s6 + $0x8] sm:$0xff]  ;;  %vm200_vm0 = vcmask 195584   ;;  %s341_s20 = sshll.u32 %s692_s5, 3 }
  0x26   : > { %217 = vmatpush.msra.mxu0 %v199_v0  ;;  %v197_v2 = vld [vmem:[%s169_s6] sm:$0xff]  ;;  %v196_v3 = vld [vmem:[#allocation5] sm:$0xff]  ;;  %s344_s26 = sshll.u32 %s563_s12, 3  ;;  %s195_s7 = scalar_lea.vmem [#allocation7], %s341_s20 }
  0x27   : > { %s237_s18 = scalar_lea.hbm %s745_s2, %s344_s26  ;;  %s239_s8 = sshll.u32 %s195_s7, 4  ;;  %s240_s8 = int_to_ptr.vmem [resolvable:$true] %s239_s8 }
  0x28   : > { %218 = vmatpush.msra.mxu0 %v198_v1  ;;  %s241_s15 = sshll.u32 %s237_s18, 4  ;;  %s226_s16 = scalar_lea.sflag [#allocation4], %s692_s5  ;;  %s242_s15 = int_to_ptr.hbm [resolvable:$true] %s241_s15 }
  0x29   : > { %s499_s19 = sshra.s32 %s242_s15, 4  ;;  %s505_s27 = scalar_lea.hbm %s745_s2, 16  ;;  %s500_s19 = int_to_ptr.hbm [resolvable:$true] %s499_s19 }
  0x2a   : > { %219 = vmatpush.msra.mxu0 %v197_v2  ;;  %s501_s24 = scalar_lea.hbm %s500_s19, 8  ;;  %p506_p11 = scmp.lt.s32.totalorder %s500_s19, %s745_s2 }
  0x2b   : > { %342 = vmatmul.msk.f32.vlgmr.msra.gmra.mxu0 %vm200_vm0, %v196_v3  ;;  %p502_p3 = scmp.ne.s32.totalorder %s500_s19, %s501_s24  ;;  %p507_p12 = scmp.lt.s32.totalorder %s505_s27, %s501_s24 }
  0x2d   : > { %p503_p5 = pnand %p502_p3, %p643_p8  ;;  %p508_p0 = por %p507_p12, %p506_p11 }
  0x2f   : > { %p504_p7 = pneg %p503_p5 }
  0x31   : > { %p509_p1 = pnand %p508_p0, %p504_p7 }
  0xa8   : > { %v221_v4 = vpop.f32.mrf.mxu0 }
  0xa9   : > { %224 = vst [vmem:[%s195_s7] sm:$0xff] %v221_v4 }
  0xaa   : > { %512 = shalt.err (!%p509_p1)
}
  0xab   : > { %356 = dma.vmem_to_hbm [thread:$0]  (%p643_p8), %s240_s8, 128, %s242_s15, %s226_s16  }
  0xac PF: > { %s253_s5 = sand.u32 1, %s551_s9   ;;  %p367_p2 = pnand %p337_p13, %p647_p9 }
  0xad   : > { %s254_s17 = scalar_lea.sflag [#allocation4], %s253_s5 }
  0xae   : > { %p368_p4 = pneg %p367_p2 }
  0xb0   : > { %546 = dma.done.wait (%p368_p4), %s254_s17, 128  }
  0xb1   : > { %548 = vsyncadd (%p368_p4), %s254_s17, 4294967168  ;;  %s19_s14 = sadd.s32 1, %s571_s14   ;;  %s753_s9 = smov %s555_s10 }
  0xb2   : > { %p16_p6 = scmp.ge.s32.totalorder %s19_s14, 4   ;;  %s754_s10 = smov %s559_s11 }
  0xb3   : > { %s755_s11 = smov %s685_s23  ;;  %s756_s12 = smov %s567_s13 }
  0xb4   : > { %s757_s13 = smov %s759_s30  ;;  %18 = sbr.rel (!%p16_p6) target bundleno = 7 (0x7), region = 77 }
  0xb9   :  { %260 = vsyncpa [#allocation3], 1 }
  0xba   :  { %262 = vsyncpa [#allocation3 + $0x1], 1 }
  0xbb   :  { %263 = vsyncpa [#allocation6], 1 }
  0xbc   :  { %264 = vsyncpa [#allocation4], 1 }
  0xbd   :  { %266 = vsyncpa [#allocation4 + $0x1], 1 }

</bundles_post_ra>
